<compile_context>
chip_gen: v7x
topology: tpu7x:2x2x1
jax: 0.10.0
libtpu: 0.0.40
codegen_flags: <defaults>
</compile_context>

<pallas_src>
import functools

import jax
import jax.numpy as jnp
from jax.experimental import pallas as pl
from jax.experimental.pallas import tpu as pltpu

_MIB = 1024 * 1024
_MAX_TILE_N = 8192


def _round_up(x: int, m: int) -> int:
    return ((x + m - 1) // m) * m


def _lightgcn_kernel(node_ref, nbr_ref, out_ref, *, fanout: int, d: int):
    # node_ref: (tile_n, D)
    # nbr_ref : (tile_n, fanout*D)  -- neighbor k of row r lives at [r, k*D:(k+1)*D]
    # out_ref : (tile_n, D)
    acc = nbr_ref[:, 0:d].astype(jnp.float32)
    for k in range(1, fanout):  # static unroll; fanout is small
        acc = acc + nbr_ref[:, k * d:(k + 1) * d].astype(jnp.float32)
    out = node_ref[...].astype(jnp.float32) * 0.5 + acc * (0.5 / fanout)
    out_ref[...] = out.astype(out_ref.dtype)


def _chip_budgets():
    """Generation-aware VMEM budgets.

    Returns (working_set_bytes, vmem_limit_bytes, multi_tensorcore).
      v5e/v6e: 128 MiB VMEM, 1 TensorCore -> big tiles, never force a split.
      v7x    :  64 MiB VMEM, 2 TensorCores -> ~28 MiB working set, split grid.
    """
    try:
        vmem_cap = int(pltpu.get_tpu_info().vmem_capacity_bytes)
    except Exception:
        vmem_cap = None
    if vmem_cap is None:
        # Unknown chip: conservative budgets that fit every generation.
        return 24 * _MIB, 48 * _MIB, False
    if vmem_cap >= 128 * _MIB:
        return 56 * _MIB, 96 * _MIB, False   # v5e / v6e: single TensorCore
    return 28 * _MIB, 48 * _MIB, True        # v7x-class: 64 MiB VMEM, 2 TCs


def _choose_tile_n(n, d_pad, fanout, itemsize, working_set, multi_tc):
    # dtype-specific sublane multiple: 8 for f32, 16 for bf16, 32 for int8/fp8.
    sublane = max(8, 32 // itemsize)
    bytes_per_row = (2 + fanout) * d_pad * itemsize        # node + out + neighbors
    max_rows_by_vmem = working_set // (2 * bytes_per_row)  # x2 double buffering
    tile_n = min(_MAX_TILE_N, max(sublane, max_rows_by_vmem), _round_up(n, sublane))
    tile_n = max(sublane, (tile_n // sublane) * sublane)
    if multi_tc and n > sublane and pl.cdiv(n, tile_n) < 2:
        # Two TensorCores (v7x): keep >= 2 steps on the "parallel" axis so the
        # second core is not idle.  Single-TC chips skip this (halving the
        # tile there only adds a pipeline step for zero parallelism gain).
        tile_n = max(sublane, _round_up(pl.cdiv(n, 2), sublane))
    return tile_n


def lightgcn_encoder(samples, fanouts):
    """JAX/Pallas equivalent of LightGCNEncoder.forward.

    samples: list of arrays; samples[0] is [N, D] node embeddings,
             samples[1] is [N*fanout, D] neighbor embeddings.
    fanouts: list of ints (len 0 or 1, matching the PyTorch assert).
    """
    num_layers = len(fanouts)
    if num_layers == 0:
        return samples[0]
    assert num_layers == 1

    node = samples[0]
    fanout = int(fanouts[0])
    n, d = node.shape
    itemsize = jnp.dtype(node.dtype).itemsize

    # Keep the feature axis lane-dense: pad D to a multiple of 128 only when
    # misaligned, so neighbor slices start on lane-tile boundaries and the
    # output stores are unmasked vst.  128-aligned D pays nothing.
    d_pad = _round_up(d, 128)
    nbr = samples[1]
    if d_pad != d:
        node_in = jnp.pad(node, ((0, 0), (0, d_pad - d)))
        nbr = jnp.pad(nbr, ((0, 0), (0, d_pad - d)))
    else:
        node_in = node
    # Free, contiguous reshape: row r holds its fanout neighbors concatenated
    # along the feature axis -> dense, lane-aligned slices in the kernel.
    nbr_in = jnp.reshape(nbr, (n, fanout * d_pad))

    working_set, vmem_limit, multi_tc = _chip_budgets()
    tile_n = _choose_tile_n(n, d_pad, fanout, itemsize, working_set, multi_tc)

    # Ragged N: no row padding / extra HBM copies.  grid = ceil(N / tile_n);
    # Pallas masks the partial last block's writeback, and the computation is
    # strictly row-independent so garbage reads in the pad rows are harmless.
    grid = (pl.cdiv(n, tile_n),)

    kernel = functools.partial(_lightgcn_kernel, fanout=fanout, d=d_pad)
    out = pl.pallas_call(
        kernel,
        out_shape=jax.ShapeDtypeStruct((n, d_pad), node.dtype),
        grid=grid,
        in_specs=[
            pl.BlockSpec((tile_n, d_pad), lambda i: (i, 0)),
            pl.BlockSpec((tile_n, fanout * d_pad), lambda i: (i, 0)),
        ],
        out_specs=pl.BlockSpec((tile_n, d_pad), lambda i: (i, 0)),
        compiler_params=pltpu.CompilerParams(
            dimension_semantics=("parallel",),
            vmem_limit_bytes=vmem_limit,
        ),
    )(node_in, nbr_in)
    return out[:, :d] if d_pad != d else out


def _reference(samples, fanouts):
    if len(fanouts) == 0:
        return samples[0]
    d = samples[1].shape[-1]
    node = samples[0].astype(jnp.float32)
    nbr = jnp.mean(
        jnp.reshape(samples[1].astype(jnp.float32), (-1, fanouts[0], d)), axis=1
    )
    return (node + nbr) / 2.0


if __name__ == "__main__":
    key = jax.random.PRNGKey(0)
    k0, k1, k2, k3, k4, k5, k6, k7 = jax.random.split(key, 8)

    # Case 1: evenly tiled shapes, f32.
    N, FANOUT, D = 16, 4, 128
    node_feats = jax.random.normal(k0, (N, D), dtype=jnp.float32)
    nbr_feats = jax.random.normal(k1, (N * FANOUT, D), dtype=jnp.float32)
    out = jax.block_until_ready(lightgcn_encoder([node_feats, nbr_feats], [FANOUT]))
    ref = _reference([node_feats, nbr_feats], [FANOUT])
    assert out.shape == (N, D)
    assert jnp.allclose(out, ref, atol=1e-6, rtol=1e-6)

    # Case 2: ragged N (exercises the partial last block -- no jnp.pad copy).
    N2, FANOUT2 = 12, 3
    node2 = jax.random.normal(k2, (N2, D), dtype=jnp.float32)
    nbr2 = jax.random.normal(k3, (N2 * FANOUT2, D), dtype=jnp.float32)
    out2 = jax.block_until_ready(lightgcn_encoder([node2, nbr2], [FANOUT2]))
    ref2 = _reference([node2, nbr2], [FANOUT2])
    assert out2.shape == (N2, D)
    assert jnp.allclose(out2, ref2, atol=1e-6, rtol=1e-6)

    # Case 3: num_layers == 0 passthrough.
    out3 = lightgcn_encoder([node_feats], [])
    assert out3 is node_feats

    # Case 4: bf16 streaming (half the HBM bytes), ragged N, f32 accumulate.
    N4, FANOUT4 = 20, 2
    node4 = jax.random.normal(k4, (N4, D), dtype=jnp.bfloat16)
    nbr4 = jax.random.normal(k5, (N4 * FANOUT4, D), dtype=jnp.bfloat16)
    out4 = jax.block_until_ready(lightgcn_encoder([node4, nbr4], [FANOUT4]))
    ref4 = _reference([node4, nbr4], [FANOUT4])
    assert out4.shape == (N4, D)
    assert out4.dtype == jnp.bfloat16
    assert jnp.allclose(out4.astype(jnp.float32), ref4, atol=2e-2, rtol=2e-2)

    # Case 5: D not a multiple of 128 (exercises the lane-pad path).
    N5, FANOUT5, D5 = 10, 5, 64
    node5 = jax.random.normal(k6, (N5, D5), dtype=jnp.float32)
    nbr5 = jax.random.normal(k7, (N5 * FANOUT5, D5), dtype=jnp.float32)
    out5 = jax.block_until_ready(lightgcn_encoder([node5, nbr5], [FANOUT5]))
    ref5 = _reference([node5, nbr5], [FANOUT5])
    assert out5.shape == (N5, D5)
    assert jnp.allclose(out5, ref5, atol=1e-6, rtol=1e-6)

    print("KERNEL_OK")
</pallas_src>

<mosaic_0001>
module attributes {stable_mosaic.version = 11 : i64} {
  func.func @_lightgcn_kernel(%arg0: i32, %arg1: memref<16x128xf32, #tpu.memory_space<vmem>>, %arg2: memref<16x512xf32, #tpu.memory_space<vmem>>, %arg3: memref<16x128xf32, #tpu.memory_space<vmem>>) attributes {dimension_semantics = [#tpu.dimension_semantics<parallel>], iteration_bounds = array<i64: 1>, scalar_prefetch = 0 : i64, scratch_operands = 0 : i64, tpu.core_type = #tpu.core_type<tc>, window_params = [{transform_indices = @transform_0, window_bounds = array<i64: 16, 128>}, {transform_indices = @transform_1, window_bounds = array<i64: 16, 512>}, {transform_indices = @transform_2, window_bounds = array<i64: 16, 128>}]} {
    %c0 = arith.constant 0 : index
    %c0_0 = arith.constant 0 : index
    %0 = vector.load %arg2[%c0, %c0_0] : memref<16x512xf32, #tpu.memory_space<vmem>>, vector<16x128xf32>
    %c0_1 = arith.constant 0 : index
    %c128 = arith.constant 128 : index
    %1 = vector.load %arg2[%c0_1, %c128] : memref<16x512xf32, #tpu.memory_space<vmem>>, vector<16x128xf32>
    %2 = arith.addf %0, %1 : vector<16x128xf32>
    %c0_2 = arith.constant 0 : index
    %c256 = arith.constant 256 : index
    %3 = vector.load %arg2[%c0_2, %c256] : memref<16x512xf32, #tpu.memory_space<vmem>>, vector<16x128xf32>
    %4 = arith.addf %2, %3 : vector<16x128xf32>
    %c0_3 = arith.constant 0 : index
    %c384 = arith.constant 384 : index
    %5 = vector.load %arg2[%c0_3, %c384] : memref<16x512xf32, #tpu.memory_space<vmem>>, vector<16x128xf32>
    %6 = arith.addf %4, %5 : vector<16x128xf32>
    %c0_4 = arith.constant 0 : index
    %c0_5 = arith.constant 0 : index
    %7 = vector.load %arg1[%c0_4, %c0_5] : memref<16x128xf32, #tpu.memory_space<vmem>>, vector<16x128xf32>
    %cst = arith.constant 5.000000e-01 : f32
    %8 = vector.broadcast %cst : f32 to vector<16x128xf32>
    %9 = arith.mulf %7, %8 : vector<16x128xf32>
    %cst_6 = arith.constant 1.250000e-01 : f32
    %10 = vector.broadcast %cst_6 : f32 to vector<16x128xf32>
    %11 = arith.mulf %6, %10 : vector<16x128xf32>
    %12 = arith.addf %9, %11 : vector<16x128xf32>
    %c0_7 = arith.constant 0 : index
    %c0_8 = arith.constant 0 : index
    %13 = vector.load %arg3[%c0_7, %c0_8] : memref<16x128xf32, #tpu.memory_space<vmem>>, vector<16x128xf32>
    tpu.vector_store %arg3[%c0_7, %c0_8], %12 {strides = array<i32>} : memref<16x128xf32, #tpu.memory_space<vmem>>, vector<16x128xf32>,
    return
  }
  func.func @transform_0(%arg0: i32) -> (i32, i32) {
    %c0_i32 = arith.constant 0 : i32
    %c0_i32_0 = arith.constant 0 : i32
    return %arg0, %c0_i32 : i32, i32
  }
  func.func @transform_1(%arg0: i32) -> (i32, i32) {
    %c0_i32 = arith.constant 0 : i32
    %c0_i32_0 = arith.constant 0 : i32
    return %arg0, %c0_i32 : i32, i32
  }
  func.func @transform_2(%arg0: i32) -> (i32, i32) {
    %c0_i32 = arith.constant 0 : i32
    %c0_i32_0 = arith.constant 0 : i32
    return %arg0, %c0_i32 : i32, i32
  }
}

</mosaic_0001>

<bundles_post_ra>
// kernel: tpu_custom_call.1
= control target key start
LH: loop header
LB: loop body
LE: loop exit
PB: predicated region body
PF: predicated region fallthrough
CT: control target
= control target key end

     0   :  { %7 = vsyncpa [#allocation3], 0  ;;  %s225_s0 = inlined_call_operand.hbm [shape: f32[16,128], index: 0, kind: input, shape index: {}]   ;;  %s226_s1 = inlined_call_operand.hbm [shape: f32[16,512], index: 1, kind: input, shape index: {}]   ;;  %s227_s2 = inlined_call_operand.hbm [shape: f32[16,128], index: 2, kind: output, shape index: {}]  }
   0x1   :  { %8 = vsyncpa [#allocation6], 0 }
   0x2   :  { %9 = vsyncpa [#allocation4], 0  ;;  %s161_s9 = smov [#allocation2]   ;;  %s89_s13 = scalar_lea.hbm %s225_s0, 256 }
   0x3   :  { %s15_s10 = sshll.u32 %s161_s9, 4  ;;  %p90_p0 = scmp.ne.s32.totalorder %s225_s0, %s89_s13  ;;  %s16_s10 = int_to_ptr.vmem [resolvable:$true] %s15_s10 }
   0x4   :  { %p93_p1 = scmp.lt.u32.totalorder %s89_s13, %s225_s0 }
   0x6   :  { %p95_p2 = pnand %p93_p1, %p90_p0 }
   0x8   :  { %98 = shalt.err (!%p95_p2)
}
   0x9   :  { %s99_s18 = scalar_lea.vmem %s16_s10, 256  ;;  %p104_p4 = scmp.lt.s32.totalorder %s16_s10, %s16_s10 }
   0xa   :  { %p100_p3 = scmp.ne.s32.totalorder %s16_s10, %s99_s18  ;;  %p105_p5 = scmp.lt.s32.totalorder %s99_s18, %s99_s18 }
   0xc   :  { %p106_p6 = por %p105_p5, %p104_p4 }
   0xe   :  { %p107_p7 = pnand %p106_p6, %p100_p3 }
  0x10   :  { %110 = shalt.err (!%p107_p7)
}
  0x11   :  { %s162_s19 = smov 128   ;;  %s163_s20 = smov 8  }
  0x12   :  { %21 = dma.hbm_to_vmem [thread:$0]  %s225_s0, 256, %s16_s10, [#allocation3], %s162_s19, %s162_s19, %s163_s20  }
  0x13   :  { %s164_s23 = smov [#allocation5]   ;;  %s111_s27 = scalar_lea.hbm %s226_s1, 1024 }
  0x14   :  { %s27_s24 = sshll.u32 %s164_s23, 4  ;;  %p112_p8 = scmp.ne.s32.totalorder %s226_s1, %s111_s27  ;;  %s28_s24 = int_to_ptr.vmem [resolvable:$true] %s27_s24 }
  0x15   :  { %p115_p9 = scmp.lt.u32.totalorder %s111_s27, %s226_s1 }
  0x17   :  { %p117_p10 = pnand %p115_p9, %p112_p8 }
  0x19   :  { %120 = shalt.err (!%p117_p10)
}
  0x1a   :  { %s121_s4 = scalar_lea.vmem %s28_s24, 1024  ;;  %p126_p12 = scmp.lt.s32.totalorder %s28_s24, %s28_s24 }
  0x1b   :  { %p122_p11 = scmp.ne.s32.totalorder %s28_s24, %s121_s4  ;;  %p127_p13 = scmp.lt.s32.totalorder %s121_s4, %s121_s4 }
  0x1d   :  { %p128_p0 = por %p127_p13, %p126_p12 }
  0x1f   :  { %p129_p1 = pnand %p128_p0, %p122_p11 }
  0x21   :  { %132 = shalt.err (!%p129_p1)
}
  0x22   :  { %s165_s0 = smov 512   ;;  %s166_s5 = smov 32  }
  0x23   :  { %33 = dma.hbm_to_vmem [thread:$0]  %s226_s1, 1024, %s28_s24, [#allocation6], %s165_s0, %s165_s0, %s166_s5  }
  0x24   :  { %155 = dma.done.wait [#allocation3], 256  }
  0x25   :  { %156 = vsyncadd [#allocation3], 4294967040 }
  0x26   :  { %157 = dma.done.wait [#allocation6], 1024  }
  0x27   :  { %158 = vsyncadd [#allocation6], 4294966272  ;;  %v40_v0 = vld [vmem:[#allocation5] sm:$0xff]  ;;  %v42_v1 = vld [vmem:[#allocation5 + $0x8] sm:$0xff]  ;;  %s167_s1 = smov [#allocation7]  }
  0x28   :  { %v46_v2 = vld [vmem:[#allocation5 + $0x10] sm:$0xff]  ;;  %v44_v3 = vadd.f32 %v42_v1, %v40_v0  ;;  %v50_v4 = vld [vmem:[#allocation5 + $0x18] sm:$0xff]  ;;  %v41_v5 = vld [vmem:[#allocation5 + $0x20] sm:$0xff]  ;;  %s69_s8 = sshll.u32 %s167_s1, 4  ;;  %s70_s8 = int_to_ptr.vmem [resolvable:$true] %s69_s8 }
  0x29   :  { %v54_v6 = vld [vmem:[#allocation2] sm:$0xff]  ;;  %v43_v7 = vld [vmem:[#allocation5 + $0x28] sm:$0xff]  ;;  %v51_v11 = vld [vmem:[#allocation5 + $0x38] sm:$0xff]  ;;  %s133_s9 = scalar_lea.vmem %s70_s8, 256  ;;  %p138_p3 = scmp.lt.s32.totalorder %s70_s8, %s70_s8 }
  0x2a   :  { %v47_v8 = vld [vmem:[#allocation5 + $0x30] sm:$0xff]  ;;  %v48_v9 = vadd.f32 %v46_v2, %v44_v3  ;;  %v45_v10 = vadd.f32 %v43_v7, %v41_v5  ;;  %v55_v12 = vld [vmem:[#allocation2 + $0x8] sm:$0xff]  ;;  %v56_v14 = vmul.f32 0.5, %v54_v6  ;;  %p134_p2 = scmp.ne.s32.totalorder %s70_s8, %s133_s9  ;;  %p139_p4 = scmp.lt.s32.totalorder %s133_s9, %s133_s9 }
  0x2b   :  { %v57_v18 = vmul.f32 0.5, %v55_v12 }
  0x2c   :  { %v52_v13 = vadd.f32 %v50_v4, %v48_v9  ;;  %v49_v15 = vadd.f32 %v47_v8, %v45_v10  ;;  %p140_p5 = por %p139_p4, %p138_p3 }
  0x2e   :  { %v58_v16 = vmul.f32 0.125, %v52_v13  ;;  %v53_v17 = vadd.f32 %v51_v11, %v49_v15  ;;  %p141_p6 = pnand %p140_p5, %p134_p2 }
  0x30   :  { %v60_v19 = vadd.f32 %v58_v16, %v56_v14  ;;  %v59_v20 = vmul.f32 0.125, %v53_v17 }
  0x32   :  { %62 = vst [vmem:[#allocation7] sm:$0xff] %v60_v19  ;;  %v61_v21 = vadd.f32 %v59_v20, %v57_v18 }
  0x34   :  { %63 = vst [vmem:[#allocation7 + $0x8] sm:$0xff] %v61_v21 }
  0x35   :  { %144 = shalt.err (!%p141_p6)
}
  0x36   :  { %s145_s12 = scalar_lea.hbm %s227_s2, 256 }
  0x37   :  { %p146_p7 = scmp.ne.s32.totalorder %s227_s2, %s145_s12  ;;  %p149_p8 = scmp.lt.u32.totalorder %s145_s12, %s227_s2 }
  0x39   :  { %p151_p9 = pnand %p149_p8, %p146_p7 }
  0x3b   :  { %154 = shalt.err (!%p151_p9)
}
  0x3c   :  { %75 = dma.vmem_to_hbm [thread:$0]  %s70_s8, 256, %s227_s2, [#allocation4], %s162_s19, %s162_s19, %s163_s20  }
  0x3d   :  { %159 = dma.done.wait [#allocation4], 256  }
  0x3e   :  { %160 = vsyncadd [#allocation4], 4294967040 }
  0x3f   :  { %79 = vsyncpa [#allocation3], 1 }
  0x40   :  { %80 = vsyncpa [#allocation6], 1 }
  0x41   :  { %81 = vsyncpa [#allocation4], 1 }

</bundles_post_ra>
